<compile_context>
chip_gen: v6e
topology: v6e:2x2x1
jax: 0.10.0
libtpu: 0.0.40
codegen_flags: <defaults>
</compile_context>

<pallas_src>
import jax
import jax.numpy as jnp
from jax import lax
from jax.experimental import pallas as pl
from jax.experimental.pallas import tpu as pltpu


def _hybrid_proj_kernel(x_ref, w_ref, b_ref, o_ref):
    # x_ref: (C, t_hw)  bf16  -- channel-major feature-map tile (native layout)
    # w_ref: (C, E)     bf16  -- projection weight (nn.Linear weight transposed)
    # b_ref: (1, E)     f32   -- projection bias
    # o_ref: (t_hw, E)        -- output tile, token-major, lane-dense in E
    acc = lax.dot_general(
        x_ref[...], w_ref[...],
        dimension_numbers=(((0,), (0,)), ((), ())),   # contract over C
        preferred_element_type=jnp.float32,           # f32 accumulation on MXU
    )                                                 # (t_hw, E)
    o_ref[...] = (acc + b_ref[...]).astype(o_ref.dtype)


def _pick_hw_tile(hw, max_tile=512):
    """Spatial tile for the matmul M dimension.

    Block-shape rule: the tile must be a multiple of 128 (lane dim of the
    activation block / sublane dim of the output block) or equal the full HW.
    """
    if hw % 128 == 0 and hw > max_tile:
        for t in range(max_tile, 0, -128):
            if hw % t == 0:
                return t
    return hw


def hybrid_embed_forward(feat, proj_weight, proj_bias, *, max_hw_tile=512):
    """Fused flatten(2).transpose(1,2) + Linear projection.

    feat:        [B, C, Hf, Wf]  backbone feature map (NCHW)
    proj_weight: [E, C]          nn.Linear weight
    proj_bias:   [E]             nn.Linear bias
    returns      [B, Hf*Wf, E]
    """
    B, C, Hf, Wf = feat.shape
    E = proj_weight.shape[0]
    HW = Hf * Wf

    # Contiguous (free) reshape only -- no HBM transpose of the activations.
    x = feat.reshape(B, C, HW)

    # bf16 operands for the MXU; accumulation stays f32 inside the kernel.
    x_bf16 = x.astype(jnp.bfloat16)
    w_mat = proj_weight.T.astype(jnp.bfloat16)        # [C, E]  (tiny, one-time)
    b_mat = proj_bias.reshape(1, E).astype(jnp.float32)

    t_hw = _pick_hw_tile(HW, max_hw_tile)
    grid = (B, HW // t_hw)

    out = pl.pallas_call(
        _hybrid_proj_kernel,
        out_shape=jax.ShapeDtypeStruct((B, HW, E), feat.dtype),
        grid_spec=pltpu.PrefetchScalarGridSpec(
            num_scalar_prefetch=0,
            grid=grid,
            in_specs=[
                # Activation tile: (C, t_hw) slice of the NCHW feature map.
                pl.BlockSpec((None, C, t_hw), lambda b, j: (b, 0, j)),
                # Weight / bias: constant block index -> fetched once.
                pl.BlockSpec((C, E), lambda b, j: (0, 0)),
                pl.BlockSpec((1, E), lambda b, j: (0, 0)),
            ],
            out_specs=pl.BlockSpec((None, t_hw, E), lambda b, j: (b, j, 0)),
        ),
        compiler_params=pltpu.CompilerParams(
            dimension_semantics=("parallel", "parallel")),
    )(x_bf16, w_mat, b_mat)

    return out


def backbone_forward(x, conv_w, conv_b):
    # TODO(synk): stand-in for HybridEmbed's arbitrary CNN backbone (plain JAX).
    y = lax.conv_general_dilated(
        x, conv_w, window_strides=(1, 1), padding="SAME",
        dimension_numbers=("NCHW", "OIHW", "NCHW"))
    y = y + conv_b[None, :, None, None]
    return jnp.maximum(y, 0.0)


def hybrid_embed(x, conv_w, conv_b, proj_w, proj_b):
    feat = backbone_forward(x, conv_w, conv_b)        # backbone(x)[-1]
    return hybrid_embed_forward(feat, proj_w, proj_b)


def _reference(x, conv_w, conv_b, proj_w, proj_b):
    feat = backbone_forward(x, conv_w, conv_b)
    B, C, Hf, Wf = feat.shape
    tokens = feat.reshape(B, C, Hf * Wf).transpose(0, 2, 1)   # flatten + transpose
    return tokens @ proj_w.T + proj_b                         # nn.Linear


if __name__ == "__main__":
    # Small config consistent with the module: batch=2, in_chans=4, img=16x16,
    # backbone feature_dim=32 (16x16 feature map -> 256 patches), embed_dim=128.
    B, Cin, H, W = 2, 4, 16, 16
    Cf = 32          # backbone feature_dim
    E = 128          # embed_dim

    key = jax.random.PRNGKey(0)
    kx, kcw, kcb, kpw, kpb = jax.random.split(key, 5)
    x = jax.random.normal(kx, (B, Cin, H, W), dtype=jnp.float32)
    conv_w = jax.random.normal(kcw, (Cf, Cin, 3, 3), dtype=jnp.float32) * 0.02
    conv_b = jax.random.normal(kcb, (Cf,), dtype=jnp.float32) * 0.02
    proj_w = jax.random.normal(kpw, (E, Cf), dtype=jnp.float32) * 0.02
    proj_b = jax.random.normal(kpb, (E,), dtype=jnp.float32) * 0.02

    out = hybrid_embed(x, conv_w, conv_b, proj_w, proj_b)
    out = jax.block_until_ready(out)

    ref = _reference(x, conv_w, conv_b, proj_w, proj_b)
    assert out.shape == (B, H * W, E), out.shape
    # bf16 MXU operands (f32 accumulation) -> slightly looser tolerance.
    assert jnp.allclose(out, ref, atol=1e-3, rtol=2e-2), "mismatch vs reference"

    print("KERNEL_OK")
</pallas_src>

<mosaic_0001>
module attributes {stable_mosaic.version = 11 : i64} {
  func.func @_hybrid_proj_kernel(%arg0: i32, %arg1: i32, %arg2: memref<1x32x256xbf16, #tpu.memory_space<vmem>>, %arg3: memref<32x128xbf16, #tpu.memory_space<vmem>>, %arg4: memref<1x128xf32, #tpu.memory_space<vmem>>, %arg5: memref<1x256x128xf32, #tpu.memory_space<vmem>>) attributes {dimension_semantics = [#tpu.dimension_semantics<parallel>, #tpu.dimension_semantics<parallel>], iteration_bounds = array<i64: 2, 1>, scalar_prefetch = 0 : i64, scratch_operands = 0 : i64, tpu.core_type = #tpu.core_type<tc>, window_params = [{transform_indices = @transform_0, window_bounds = array<i64: 1, 32, 256>}, {pipeline_mode = #tpu.pipeline_mode<synchronous>, transform_indices = @transform_1, window_bounds = array<i64: 32, 128>}, {pipeline_mode = #tpu.pipeline_mode<synchronous>, transform_indices = @transform_2, window_bounds = array<i64: 1, 128>}, {transform_indices = @transform_3, window_bounds = array<i64: 1, 256, 128>}]} {
    %c0 = arith.constant 0 : index
    %c0_0 = arith.constant 0 : index
    %c0_1 = arith.constant 0 : index
    %0 = vector.load %arg2[%c0, %c0_0, %c0_1] : memref<1x32x256xbf16, #tpu.memory_space<vmem>>, vector<1x32x256xbf16>
    %1 = vector.shape_cast %0 : vector<1x32x256xbf16> to vector<32x256xbf16>
    %c0_2 = arith.constant 0 : index
    %c0_3 = arith.constant 0 : index
    %2 = vector.load %arg3[%c0_2, %c0_3] : memref<32x128xbf16, #tpu.memory_space<vmem>>, vector<32x128xbf16>
    %cst = arith.constant dense<0.000000e+00> : vector<256x128xf32>
    %3 = tpu.matmul %1, %2, %cst {dimension_numbers = #tpu.dot_dimension_numbers<[0], [0], [1], [1], [0, 1, 1, 1], [], []>} : vector<32x256xbf16>, vector<32x128xbf16>, vector<256x128xf32> -> vector<256x128xf32>
    %c0_4 = arith.constant 0 : index
    %c0_5 = arith.constant 0 : index
    %4 = vector.load %arg4[%c0_4, %c0_5] : memref<1x128xf32, #tpu.memory_space<vmem>>, vector<1x128xf32>
    %5 = vector.broadcast %4 : vector<1x128xf32> to vector<256x128xf32>
    %6 = arith.addf %3, %5 : vector<256x128xf32>
    %c0_6 = arith.constant 0 : index
    %c0_7 = arith.constant 0 : index
    %c0_8 = arith.constant 0 : index
    %7 = vector.load %arg5[%c0_6, %c0_7, %c0_8] : memref<1x256x128xf32, #tpu.memory_space<vmem>>, vector<1x256x128xf32>
    %8 = vector.shape_cast %7 : vector<1x256x128xf32> to vector<256x128xf32>
    %9 = vector.shape_cast %6 : vector<256x128xf32> to vector<1x256x128xf32>
    tpu.vector_store %arg5[%c0_6, %c0_7, %c0_8], %9 {strides = array<i32>} : memref<1x256x128xf32, #tpu.memory_space<vmem>>, vector<1x256x128xf32>,
    return
  }
  func.func @transform_0(%arg0: i32, %arg1: i32) -> (i32, i32, i32) {
    %c0_i32 = arith.constant 0 : i32
    %c0_i32_0 = arith.constant 0 : i32
    return %arg0, %c0_i32, %arg1 : i32, i32, i32
  }
  func.func @transform_1(%arg0: i32, %arg1: i32) -> (i32, i32) {
    %c0_i32 = arith.constant 0 : i32
    %c0_i32_0 = arith.constant 0 : i32
    %c0_i32_1 = arith.constant 0 : i32
    return %c0_i32, %c0_i32_0 : i32, i32
  }
  func.func @transform_2(%arg0: i32, %arg1: i32) -> (i32, i32) {
    %c0_i32 = arith.constant 0 : i32
    %c0_i32_0 = arith.constant 0 : i32
    %c0_i32_1 = arith.constant 0 : i32
    return %c0_i32, %c0_i32_0 : i32, i32
  }
  func.func @transform_3(%arg0: i32, %arg1: i32) -> (i32, i32, i32) {
    %c0_i32 = arith.constant 0 : i32
    %c0_i32_0 = arith.constant 0 : i32
    return %arg0, %arg1, %c0_i32 : i32, i32, i32
  }
}

</mosaic_0001>

<bundles_post_ra>
// kernel: tpu_custom_call.1
= control target key start
LH: loop header
LB: loop body
LE: loop exit
PB: predicated region body
PF: predicated region fallthrough
CT: control target
= control target key end

     0   :  { %8 = vsyncpa [#allocation3], 0  ;;  %s1286_s0 = inlined_call_operand.hbm [shape: bf16[2,32,256], index: 0, kind: input, shape index: {}]   ;;  %s1287_s1 = inlined_call_operand.hbm [shape: bf16[32,128], index: 1, kind: input, shape index: {}]   ;;  %s1288_s2 = inlined_call_operand.vmem [shape: f32[1,128], index: 2, kind: input, shape index: {}]   ;;  %s1289_s3 = inlined_call_operand.hbm [shape: f32[2,256,128], index: 3, kind: output, shape index: {}]  }
   0x1   :  { %10 = vsyncpa [#allocation3 + $0x1], 0 }
   0x2   :  { %11 = vsyncpa [#allocation6], 0 }
   0x3   :  { %12 = vsyncpa [#allocation4], 0 }
   0x4   :  { %14 = vsyncpa [#allocation4 + $0x1], 0  ;;  %s1016_s12 = smov 0   ;;  %s1018_s13 = smov 0  }
   0x5   :  { %s1020_s14 = smov 0   ;;  %s1022_s15 = smov 0  }
   0x6   :  { %s1024_s16 = smov 0   ;;  %s1026_s17 = smov 0  }
   0x7 LB: > { %s659_s18 = sadd.s32 4294967295, %s985_s17   ;;  %s660_s19 = sadd.s32 4294967294, %s985_s17   ;;  %s985_s17 = sphi %s1026_s17, %s20_s17   ;;  %s981_s16 = sphi %s1024_s16, %s1307_s16   ;;  %s977_s15 = sphi %s1022_s15, %s1306_s15   ;;  %s973_s14 = sphi %s1020_s14, %s1305_s14   ;;  %s969_s13 = sphi %s1018_s13, %s1304_s13   ;;  %s965_s12 = sphi %s1016_s12, %s1303_s12  }
   0x8   : > { %p54_p0 = scmp.ne.s32.totalorder %s969_s13, %s965_s12  ;;  %p1050_p1 = scmp.eq.s32.totalorder %s659_s18, 0 }
   0x9   : > { %p1054_p2 = scmp.eq.s32.totalorder %s659_s18, 1  ;;  %p128_p3 = scmp.eq.s32.totalorder %s660_s19, 1 }
   0xa   : > { %p1060_p4 = por %p1050_p1, %p54_p0  ;;  %p661_p5 = scmp.ge.s32.totalorder %s985_s17, 1 }
   0xb   : > { %p1065_p6 = por %p128_p3, %p54_p0  ;;  %p135_p7 = scmp.lt.s32.totalorder %s985_s17, 3 }
   0xc   : > { %s1293_s22 = scalar_select %p1060_p4, 1, 0 }
   0xd   : > { %s1294_s23 = scalar_select %p1065_p6, 1, 0 }
   0xe   : > { %p1070_p8 = pnand %p661_p5, %p135_p7  ;;  %s987_s25 = smov [#allocation5]  }
   0xf   : > { %s147_s26 = sshll.u32 %s987_s25, 4  ;;  %s32_s28 = sadd.s32 1, %s981_s16  ;;  %s148_s26 = int_to_ptr.vmem [resolvable:$true] %s147_s26 }
  0x10   : > { %p767_p9 = pneg %p1070_p8  ;;  %s858_s29 = scalar_lea.vmem %s148_s26, 256 }
  0x11   : > { %p859_p13 = scmp.ne.s32.totalorder %s148_s26, %s858_s29  ;;  %p866_p5 = scmp.lt.s32.totalorder %s148_s26, %s148_s26 }
  0x12   : > { %p1079_p11 = pnand %p767_p9, %p1050_p1  ;;  %p867_p7 = scmp.lt.s32.totalorder %s858_s29, %s858_s29 }
  0x14   : > { %p849_p12 = pneg %p1079_p11  ;;  %p868_p6 = por %p867_p7, %p866_p5 }
  0x16   : > { %p861_p0 = pnand %p859_p13, %p849_p12 }
  0x18   : > { %p862_p3 = pneg %p861_p0 }
  0x1a   : > { %p869_p4 = pnand %p868_p6, %p862_p3 }
  0x1c   : > { %872 = shalt.err (!%p869_p4)
}
  0x1d   : > { %s988_s30 = smov 64   ;;  %s989_s4 = smov 4  }
  0x1e   : > { %770 = dma.hbm_to_vmem [thread:$0]  (!%p1079_p11), %s1287_s1, 256, %s148_s26, [#allocation6], %s988_s30, %s988_s30, %s989_s4  }
  0x1f   : > { %p34_p6 = scmp.ge.s32.totalorder %s32_s28, 2  ;;  %s41_s7 = sadd.s32 1, %s973_s14 }
  0x20   : > { %p48_p4 = scmp.ne.s32.totalorder %s973_s14, %s969_s13  ;;  %p49_p9 = scmp.eq.s32.totalorder %s985_s17, 0 }
  0x21   : > { %s1309_s28 = smov (%p34_p6, %s32_s28), 0  ;;  %p780_p0 = scmp.lt.s32.totalorder %s985_s17, 2 }
  0x22   : > { %p1097_p12 = por %p49_p9, %p48_p4  ;;  %p1103_p13 = por %p1054_p2, %p48_p4 }
  0x23   : > { %s36_s10 = ssub.s32 %s981_s16, %s1309_s28  ;;  %s164_s11 = sand.u32 1, %s973_s14  }
  0x24   : > { %p39_p11 = scmp.eq.s32.totalorder %s36_s10, 0  ;;  %s664_s18 = sshll.u32 %s164_s11, 5 }
  0x25   : > { %s699_s25 = sshll.u32 %s981_s16, 9  ;;  %s168_s30 = scalar_lea.vmem [#allocation2], %s664_s18 }
  0x26   : > { %s1112_s19 = scalar_select %p39_p11, %s973_s14, %s41_s7  }
  0x27   : > { %s176_s29 = scalar_lea.hbm %s1286_s0, %s699_s25  ;;  %s177_s4 = sshll.u32 %s168_s30, 4  ;;  %s178_s4 = int_to_ptr.vmem [resolvable:$true] %s177_s4 }
  0x28   : > { %p1120_p2 = pnand %p780_p0, %p1097_p12  ;;  %s165_s5 = scalar_lea.sflag [#allocation3], %s164_s11 }
  0x29   : > { %s886_s6 = scalar_lea.vmem %s178_s4, 512  ;;  %s990_s7 = smov [#allocation2]  }
  0x2a   : > { %p875_p3 = pneg %p1120_p2  ;;  %p887_p5 = scmp.ne.s32.totalorder %s178_s4, %s886_s6 }
  0x2b   : > { %s891_s10 = sshll.u32 %s990_s7, 4  ;;  %s892_s10 = int_to_ptr.vmem [resolvable:$false] %s891_s10 }
  0x2c   : > { %p889_p7 = pnand %p887_p5, %p875_p3  ;;  %s893_s25 = scalar_lea.vmem %s892_s10, 1024 }
  0x2d   : > { %p894_p4 = scmp.lt.s32.totalorder %s178_s4, %s892_s10  ;;  %p895_p9 = scmp.lt.s32.totalorder %s893_s25, %s886_s6 }
  0x2e   : > { %p890_p6 = pneg %p889_p7 }
  0x2f   : > { %p896_p11 = por %p895_p9, %p894_p4 }
  0x31   : > { %p897_p10 = pnand %p896_p11, %p890_p6 }
  0x33   : > { %900 = shalt.err (!%p897_p10)
}
  0x34   : > { %s991_s8 = smov 128   ;;  %s992_s18 = smov 8  }
  0x35   : > { %774 = dma.hbm_to_vmem [thread:$0]  (!%p1120_p2), %s176_s29, 512, %s178_s4, %s165_s5, %s991_s8, %s991_s8, %s992_s18  }
  0x36   : > { %189 = sbr.rel (%p1070_p8) target bundleno = 405 (0x195), region = 32  ;;  %s1131_s11 = sand.u32 (!%p1070_p8), 1, %s969_s13  }
  0x37   : > { %s668_s26 = sshll.u32 (!%p1070_p8), %s1131_s11, 5  ;;  %s192_s27 = scalar_lea.sflag (!%p1070_p8), [#allocation3], %s1131_s11 }
  0x38   : > { %s195_s30 = scalar_lea.vmem (!%p1070_p8), [#allocation2], %s668_s26  ;;  %p1300_p12 = scmp.ne.s32.totalorder (!%p1070_p8), %s1293_s22, 0 }
  0x3b   : > { %952 = dma.done.wait (%p1300_p12), %s192_s27, 512  }
  0x3c   : > { %954 = vsyncadd (%p1300_p12), %s192_s27, 4294966784 }
  0x3d   : > { %956 = dma.done.wait (%p1050_p1), [#allocation6], 256  }
  0x3e   : > { %958 = vsyncadd (%p1050_p1), [#allocation6], 4294967040  ;;  %v839_v0 = vld [vmem:[%s195_s30 + $0x4] ss:$8 sps:$4 sm:$0xff]   ;;  %v841_v1 = vld [vmem:[%s195_s30] ss:$8 sps:$4 sm:$0xff]  }
  0x3f   : > { %276 = vxpose.xlu1.c.b16.start [1/2] (short) %v839_v0, 128  ;;  %v842_v2 = vld [vmem:[%s195_s30 + $0x14] ss:$8 sps:$4 sm:$0xff]   ;;  %v844_v3 = vld [vmem:[%s195_s30 + $0x10] ss:$8 sps:$4 sm:$0xff]   ;;  %260 = vxpose.xlu0.c.b16.start [1/2] (short) %v841_v1, 128  ;;  %v845_v4 = vld [vmem:[#allocation5 + $0x8] sm:$0xff]   ;;  %vm304_vm0 = vcmask 261120  }
  0x40   : > { %v846_v5 = vld [vmem:[#allocation5] sm:$0xff]   ;;  %719 = vmatprep.subr.bf16.mxu0 %v845_v4  ;;  %755 = vmatprep.subr.bf16.mxu1 %v845_v4  ;;  %s670_s20 = sshll.u32 %s1131_s11, 8  ;;  %s700_s4 = sshll.u32 %s977_s15, 12 }
  0x41   : > { %720 = vmatpush3.bf16.msra.mxu0 %v845_v4  ;;  %757 = vmatpush3.bf16.msra.mxu1 %v845_v4  ;;  %v1163_v22 = vld [vmem:[%s1288_s2] ss:$0 sm:$0xff]  ;;  %s1167_s29 = scalar_lea.vmem [#allocation7], %s670_s20  ;;  %s1232_s15 = scalar_lea.hbm %s1289_s3, %s700_s4 }
  0x42   : > { %721 = vmatprep.subr.bf16.mxu0 %v846_v5  ;;  %756 = vmatprep.subr.bf16.mxu1 %v846_v5  ;;  %s562_s21 = sshll.u32 %s1167_s29, 4  ;;  %s547_s7 = scalar_lea.sflag [#allocation4], %s1131_s11  ;;  %s1234_s21 = int_to_ptr.vmem [resolvable:$true] %s562_s21 }
  0x43   : > { %277 = vxpose.xlu1.c.b16.end [2/2] (short) %v842_v2, 128  ;;  %261 = vxpose.xlu0.c.b16.end [2/2] (short) %v844_v3, 128  ;;  %s901_s10 = scalar_lea.vmem %s1234_s21, 4096  ;;  %s993_s25 = smov [#allocation7]  }
  0x44   : > { %p902_p1 = scmp.ne.s32.totalorder %s1234_s21, %s901_s10  ;;  %s905_s8 = sshll.u32 %s993_s25, 4  ;;  %s906_s8 = int_to_ptr.vmem [resolvable:$false] %s905_s8 }
  0x45   : > { %722 = vmatpush3.bf16.msra.mxu0 %v846_v5  ;;  %758 = vmatpush3.bf16.msra.mxu1 %v846_v5  ;;  %s907_s18 = scalar_lea.vmem %s906_s8, 8192  ;;  %p908_p0 = scmp.lt.s32.totalorder %s1234_s21, %s906_s8 }
  0x46   : > { %p903_p8 = pnand %p902_p1, %p1103_p13  ;;  %p909_p2 = scmp.lt.s32.totalorder %s907_s18, %s901_s10 }
  0x48   : > { %p904_p10 = pneg %p903_p8  ;;  %p910_p3 = por %p909_p2, %p908_p0 }
  0x4a   : > { %p911_p5 = pnand %p910_p3, %p904_p10 }
  0xa1   : > { %v284_v6 = vpop.trf.xlu1  ;;  %v268_v7 = vpop.trf.xlu0 }
  0xa2   : > { %739 = vmatprep.mubr.msk.bf16.mxu1 %vm304_vm0, %v284_v6  ;;  %723 = vmatprep.mubr.msk.bf16.mxu0 %vm304_vm0, %v268_v7 }
  0xa5   : > { %v285_v8 = vpop.trf.xlu1  ;;  %v269_v9 = vpop.trf.xlu0 }
  0xa6   : > { %740 = vmatmul.mubr.msk.bf16.vlgmr.msra.gmra.mxu1 %vm304_vm0, %v285_v8  ;;  %724 = vmatmul.mubr.msk.bf16.vlgmr.msra.gmra.mxu0 %vm304_vm0, %v269_v9 }
  0xa9   : > { %v286_v10 = vpop.trf.xlu1  ;;  %v270_v11 = vpop.trf.xlu0 }
  0xaa   : > { %743 = vmatprep.mubr.msk.bf16.mxu1 %vm304_vm0, %v286_v10  ;;  %727 = vmatprep.mubr.msk.bf16.mxu0 %vm304_vm0, %v270_v11 }
  0xad   : > { %v287_v12 = vpop.trf.xlu1  ;;  %v271_v13 = vpop.trf.xlu0 }
  0xae   : > { %744 = vmatmul.mubr.msk.bf16.gmra.mxu1 %vm304_vm0, %v287_v12  ;;  %728 = vmatmul.mubr.msk.bf16.gmra.mxu0 %vm304_vm0, %v271_v13 }
  0xb1   : > { %v288_v14 = vpop.trf.xlu1  ;;  %v272_v15 = vpop.trf.xlu0 }
  0xb2   : > { %747 = vmatprep.mubr.msk.bf16.mxu1 %vm304_vm0, %v288_v14  ;;  %731 = vmatprep.mubr.msk.bf16.mxu0 %vm304_vm0, %v272_v15 }
  0xb5   : > { %v289_v16 = vpop.trf.xlu1  ;;  %v273_v17 = vpop.trf.xlu0 }
  0xb6   : > { %748 = vmatmul.mubr.msk.bf16.gmra.mxu1 %vm304_vm0, %v289_v16  ;;  %732 = vmatmul.mubr.msk.bf16.gmra.mxu0 %vm304_vm0, %v273_v17 }
  0xb9   : > { %v290_v18 = vpop.trf.xlu1  ;;  %v274_v19 = vpop.trf.xlu0 }
  0xba   : > { %751 = vmatprep.mubr.msk.bf16.mxu1 %vm304_vm0, %v290_v18  ;;  %735 = vmatprep.mubr.msk.bf16.mxu0 %vm304_vm0, %v274_v19 }
  0xbd   : > { %v291_v20 = vpop.trf.xlu1  ;;  %v275_v21 = vpop.trf.xlu0 }
  0xbe   : > { %752 = vmatmul.mubr.msk.bf16.gmra.mxu1 %vm304_vm0, %v291_v20  ;;  %736 = vmatmul.mubr.msk.bf16.gmra.mxu0 %vm304_vm0, %v275_v21 }
 0x166   : > { %v741_v23 = vpop.f32.mrf.mxu1  ;;  %v725_v24 = vpop.f32.mrf.mxu0 }
 0x167   : > { %v460_v25 = vadd.f32 %v741_v23, %v1163_v22  ;;  %v396_v26 = vadd.f32 %v725_v24, %v1163_v22 }
 0x168   : > { %v451_v27 = vpop.f32.mrf.mxu1  ;;  %v387_v28 = vpop.f32.mrf.mxu0 }
 0x169   : > { %532 = vst [vmem:[%s1167_s29 + $0x90] sm:$0xff] %v460_v25  ;;  %v452_v29 = vadd.f32 %v1163_v22, %v451_v27  ;;  %516 = vst [vmem:[%s1167_s29 + $0x10] sm:$0xff] %v396_v26  ;;  %v388_v30 = vadd.f32 %v1163_v22, %v387_v28 }
 0x16a   : > { %v742_v31 = vpop.f32.mrf.mxu1  ;;  %v726_v32 = vpop.f32.mrf.mxu0 }
 0x16b   : > { %530 = vst [vmem:[%s1167_s29 + $0x80] sm:$0xff] %v452_v29  ;;  %v463_v33 = vadd.f32 %v742_v31, %v1163_v22  ;;  %514 = vst [vmem:[%s1167_s29] sm:$0xff] %v388_v30  ;;  %v399_v34 = vadd.f32 %v726_v32, %v1163_v22 }
 0x16c   : > { %v454_v35 = vpop.f32.mrf.mxu1  ;;  %v390_v36 = vpop.f32.mrf.mxu0 }
 0x16d   : > { %533 = vst [vmem:[%s1167_s29 + $0x98] sm:$0xff] %v463_v33  ;;  %v455_v37 = vadd.f32 %v1163_v22, %v454_v35  ;;  %517 = vst [vmem:[%s1167_s29 + $0x18] sm:$0xff] %v399_v34  ;;  %v391_v38 = vadd.f32 %v1163_v22, %v390_v36 }
 0x16e   : > { %v745_v39 = vpop.f32.mrf.mxu1  ;;  %v729_v40 = vpop.f32.mrf.mxu0 }
 0x16f   : > { %531 = vst [vmem:[%s1167_s29 + $0x88] sm:$0xff] %v455_v37  ;;  %v476_v41 = vadd.f32 %v745_v39, %v1163_v22  ;;  %515 = vst [vmem:[%s1167_s29 + $0x8] sm:$0xff] %v391_v38  ;;  %v412_v42 = vadd.f32 %v729_v40, %v1163_v22 }
 0x170   : > { %v467_v43 = vpop.f32.mrf.mxu1  ;;  %v403_v44 = vpop.f32.mrf.mxu0 }
 0x171   : > { %536 = vst [vmem:[%s1167_s29 + $0xb0] sm:$0xff] %v476_v41  ;;  %v468_v45 = vadd.f32 %v1163_v22, %v467_v43  ;;  %520 = vst [vmem:[%s1167_s29 + $0x30] sm:$0xff] %v412_v42  ;;  %v404_v46 = vadd.f32 %v1163_v22, %v403_v44 }
 0x172   : > { %v746_v47 = vpop.f32.mrf.mxu1  ;;  %v730_v48 = vpop.f32.mrf.mxu0 }
 0x173   : > { %534 = vst [vmem:[%s1167_s29 + $0xa0] sm:$0xff] %v468_v45  ;;  %v479_v49 = vadd.f32 %v746_v47, %v1163_v22  ;;  %518 = vst [vmem:[%s1167_s29 + $0x20] sm:$0xff] %v404_v46  ;;  %v415_v50 = vadd.f32 %v730_v48, %v1163_v22 }
 0x174   : > { %v470_v51 = vpop.f32.mrf.mxu1  ;;  %v406_v52 = vpop.f32.mrf.mxu0 }
 0x175   : > { %537 = vst [vmem:[%s1167_s29 + $0xb8] sm:$0xff] %v479_v49  ;;  %v471_v53 = vadd.f32 %v1163_v22, %v470_v51  ;;  %521 = vst [vmem:[%s1167_s29 + $0x38] sm:$0xff] %v415_v50  ;;  %v407_v54 = vadd.f32 %v1163_v22, %v406_v52 }
 0x176   : > { %v749_v55 = vpop.f32.mrf.mxu1  ;;  %v733_v56 = vpop.f32.mrf.mxu0 }
 0x177   : > { %535 = vst [vmem:[%s1167_s29 + $0xa8] sm:$0xff] %v471_v53  ;;  %v492_v57 = vadd.f32 %v749_v55, %v1163_v22  ;;  %519 = vst [vmem:[%s1167_s29 + $0x28] sm:$0xff] %v407_v54  ;;  %v428_v58 = vadd.f32 %v733_v56, %v1163_v22 }
 0x178   : > { %v483_v59 = vpop.f32.mrf.mxu1  ;;  %v419_v60 = vpop.f32.mrf.mxu0 }
 0x179   : > { %540 = vst [vmem:[%s1167_s29 + $0xd0] sm:$0xff] %v492_v57  ;;  %v484_v61 = vadd.f32 %v1163_v22, %v483_v59  ;;  %524 = vst [vmem:[%s1167_s29 + $0x50] sm:$0xff] %v428_v58  ;;  %v420_v62 = vadd.f32 %v1163_v22, %v419_v60 }
 0x17a   : > { %v750_v63 = vpop.f32.mrf.mxu1  ;;  %v734_v0 = vpop.f32.mrf.mxu0 }
 0x17b   : > { %538 = vst [vmem:[%s1167_s29 + $0xc0] sm:$0xff] %v484_v61  ;;  %v495_v1 = vadd.f32 %v750_v63, %v1163_v22  ;;  %522 = vst [vmem:[%s1167_s29 + $0x40] sm:$0xff] %v420_v62  ;;  %v431_v2 = vadd.f32 %v734_v0, %v1163_v22 }
 0x17c   : > { %v486_v3 = vpop.f32.mrf.mxu1  ;;  %v422_v4 = vpop.f32.mrf.mxu0 }
 0x17d   : > { %541 = vst [vmem:[%s1167_s29 + $0xd8] sm:$0xff] %v495_v1  ;;  %v487_v5 = vadd.f32 %v1163_v22, %v486_v3  ;;  %525 = vst [vmem:[%s1167_s29 + $0x58] sm:$0xff] %v431_v2  ;;  %v423_v6 = vadd.f32 %v1163_v22, %v422_v4 }
 0x17e   : > { %v753_v7 = vpop.f32.mrf.mxu1  ;;  %v737_v8 = vpop.f32.mrf.mxu0 }
 0x17f   : > { %539 = vst [vmem:[%s1167_s29 + $0xc8] sm:$0xff] %v487_v5  ;;  %v508_v9 = vadd.f32 %v753_v7, %v1163_v22  ;;  %523 = vst [vmem:[%s1167_s29 + $0x48] sm:$0xff] %v423_v6  ;;  %v444_v10 = vadd.f32 %v737_v8, %v1163_v22 }
 0x180   : > { %v499_v11 = vpop.f32.mrf.mxu1  ;;  %v435_v12 = vpop.f32.mrf.mxu0 }
 0x181   : > { %544 = vst [vmem:[%s1167_s29 + $0xf0] sm:$0xff] %v508_v9  ;;  %v500_v13 = vadd.f32 %v1163_v22, %v499_v11  ;;  %528 = vst [vmem:[%s1167_s29 + $0x70] sm:$0xff] %v444_v10  ;;  %v436_v14 = vadd.f32 %v1163_v22, %v435_v12 }
 0x182   : > { %v754_v15 = vpop.f32.mrf.mxu1  ;;  %v738_v16 = vpop.f32.mrf.mxu0 }
 0x183   : > { %542 = vst [vmem:[%s1167_s29 + $0xe0] sm:$0xff] %v500_v13  ;;  %v511_v17 = vadd.f32 %v754_v15, %v1163_v22  ;;  %526 = vst [vmem:[%s1167_s29 + $0x60] sm:$0xff] %v436_v14  ;;  %v447_v18 = vadd.f32 %v738_v16, %v1163_v22 }
 0x184   : > { %v502_v19 = vpop.f32.mrf.mxu1  ;;  %v438_v20 = vpop.f32.mrf.mxu0 }
 0x185   : > { %545 = vst [vmem:[%s1167_s29 + $0xf8] sm:$0xff] %v511_v17  ;;  %v503_v21 = vadd.f32 %v1163_v22, %v502_v19  ;;  %529 = vst [vmem:[%s1167_s29 + $0x78] sm:$0xff] %v447_v18  ;;  %v439_v23 = vadd.f32 %v1163_v22, %v438_v20 }
 0x187   : > { %543 = vst [vmem:[%s1167_s29 + $0xe8] sm:$0xff] %v503_v21  ;;  %527 = vst [vmem:[%s1167_s29 + $0x68] sm:$0xff] %v439_v23 }
 0x188   : > { %914 = shalt.err (!%p911_p5)
}
 0x189   : > { %s915_s26 = scalar_lea.hbm %s1232_s15, 4096  ;;  %s919_s20 = scalar_lea.hbm %s1289_s3, 8192 }
 0x18a   : > { %p916_p7 = scmp.ne.s32.totalorder %s1232_s15, %s915_s26  ;;  %p920_p9 = scmp.lt.s32.totalorder %s1232_s15, %s1289_s3 }
 0x18b   : > { %p921_p11 = scmp.lt.s32.totalorder %s919_s20, %s915_s26 }
 0x18c   : > { %p917_p6 = pnand %p916_p7, %p1103_p13 }
 0x18d   : > { %p922_p12 = por %p921_p11, %p920_p9 }
 0x18e   : > { %p918_p4 = pneg %p917_p6 }
 0x190   : > { %p923_p1 = pnand %p922_p12, %p918_p4 }
 0x192   : > { %926 = shalt.err (!%p923_p1)
}
 0x193   : > { %s994_s29 = smov 128   ;;  %s995_s4 = smov 8  }
 0x194   : > { %765 = dma.vmem_to_hbm [thread:$0]  (%p1103_p13), %s1234_s21, 4096, %s1232_s15, %s547_s7, %s994_s29, %s994_s29, %s995_s4  }
 0x195 PF: > { %s577_s5 = sand.u32 1, %s965_s12   ;;  %p1301_p8 = scmp.ne.s32.totalorder %s1294_s23, 0 }
 0x196   : > { %p1302_p10 = scmp.ge.s32.totalorder %s985_s17, 2  ;;  %s578_s6 = scalar_lea.sflag [#allocation4], %s577_s5 }
 0x198   : > { %p776_p0 = pnand %p1302_p10, %p1301_p8 }
 0x19a   : > { %p777_p2 = pneg %p776_p0 }
 0x19c   : > { %960 = dma.done.wait (%p777_p2), %s578_s6, 4096  }
 0x19d   : > { %962 = vsyncadd (%p777_p2), %s578_s6, 4294963200  ;;  %s20_s17 = sadd.s32 1, %s985_s17   ;;  %s1303_s12 = smov %s969_s13 }
 0x19e   : > { %p17_p3 = scmp.ge.s32.totalorder %s20_s17, 4   ;;  %s1304_s13 = smov %s973_s14 }
 0x19f   : > { %s1305_s14 = smov %s1112_s19  ;;  %s1306_s15 = smov %s981_s16 }
 0x1a0   : > { %s1307_s16 = smov %s1309_s28  ;;  %19 = sbr.rel (!%p17_p3) target bundleno = 7 (0x7), region = 81 }
 0x1a5   :  { %583 = vsyncpa [#allocation3], 1 }
 0x1a6   :  { %585 = vsyncpa [#allocation3 + $0x1], 1 }
 0x1a7   :  { %586 = vsyncpa [#allocation6], 1 }
 0x1a8   :  { %587 = vsyncpa [#allocation4], 1 }
 0x1a9   :  { %589 = vsyncpa [#allocation4 + $0x1], 1 }

</bundles_post_ra>
